<compile_context>
chip_gen: v7x
topology: tpu7x:2x2x1
jax: 0.10.0
libtpu: 0.0.40
codegen_flags: <defaults>
</compile_context>

<pallas_src>
import functools
import math

import jax
import jax.numpy as jnp
from jax.experimental import pallas as pl
from jax.experimental.pallas import tpu as pltpu

_MIB = 1024 * 1024


def _vmem_limit_bytes():
    """Per-generation scoped-VMEM budget (v7x only has 64 MiB per TensorCore)."""
    cap = None
    try:
        cap = getattr(pltpu.get_tpu_info(), "vmem_capacity_bytes", None)
    except Exception:
        cap = None
    if cap is None:
        cap = 64 * _MIB                  # conservative (v7x-sized) fallback
    if cap >= 128 * _MIB:
        return 96 * _MIB                 # v5e / v6e
    return 48 * _MIB                     # v7x: leave headroom under 64 MiB


# ----------------------------- Kernel 1: fc ---------------------------------
def _fc_kernel(x_ref, w_ref, o_ref, acc_ref):
    # x: (tm, tk) bf16, w: (hfp, tk) bf16 -- contract dim 1 of both (no w.T in
    # the wrapper); f32 accumulation in VMEM scratch across the K grid axis.
    @pl.when(pl.program_id(1) == 0)
    def _():
        acc_ref[...] = jnp.zeros_like(acc_ref)

    acc_ref[...] += jax.lax.dot_general(
        x_ref[...], w_ref[...],
        dimension_numbers=(((1,), (1,)), ((), ())),
        preferred_element_type=jnp.float32)

    @pl.when(pl.program_id(1) == pl.num_programs(1) - 1)
    def _():
        o_ref[...] = acc_ref[...]


def fc_project(x, w, *, tm=512, tk=1024):
    """x: (N, C_in) f32, w: (HF, C_in) f32 (nn.Linear.weight). Returns x @ w.T (f32).

    bf16 MXU operands + f32 accumulation.  HF is padded up to a multiple of
    128 inside the kernel so output stores are lane-dense; the pad is sliced
    off before returning.  C_in is zero-padded to a multiple of tk (exact)
    instead of collapsing the K tiling.
    """
    n, c_in = x.shape
    hf = w.shape[0]
    hfp = 128 * ((hf + 127) // 128)

    xb = x.astype(jnp.bfloat16)
    wb = w.astype(jnp.bfloat16)
    if hfp != hf:
        wb = jnp.pad(wb, ((0, hfp - hf), (0, 0)))

    tm = n if n <= tm else tm
    tk = min(tk, c_in)
    k_pad = (-c_in) % tk
    if k_pad:
        xb = jnp.pad(xb, ((0, 0), (0, k_pad)))
        wb = jnp.pad(wb, ((0, 0), (0, k_pad)))
    c_in_p = c_in + k_pad

    grid = (pl.cdiv(n, tm), c_in_p // tk)
    cost = pl.CostEstimate(
        flops=2 * n * c_in_p * hfp,
        transcendentals=0,
        bytes_accessed=2 * (n * c_in_p + hfp * c_in_p) + 4 * n * hfp)
    out = pl.pallas_call(
        _fc_kernel,
        out_shape=jax.ShapeDtypeStruct((n, hfp), jnp.float32),
        grid_spec=pltpu.PrefetchScalarGridSpec(
            num_scalar_prefetch=0,
            grid=grid,
            in_specs=[
                pl.BlockSpec((tm, tk), lambda i, k: (i, k)),
                # When tk == c_in_p the weight block index is constant, so the
                # whole (padded) weight stays resident across the M tiles.
                pl.BlockSpec((hfp, tk), lambda i, k: (0, k)),
            ],
            out_specs=pl.BlockSpec((tm, hfp), lambda i, k: (i, 0)),
            scratch_shapes=[pltpu.VMEM((tm, hfp), jnp.float32)],
        ),
        compiler_params=pltpu.CompilerParams(
            dimension_semantics=("parallel", "arbitrary"),
            vmem_limit_bytes=_vmem_limit_bytes()),
        cost_estimate=cost,
    )(xb, wb)
    return out[:, :hf] if hfp != hf else out


# ------------------------ Kernel 2: GAT attention ----------------------------
def _gat_attn_kernel(fsrc_ref, el_ref, er_ref, adj_ref, bias_ref, o_ref, *,
                     num_heads, out_feats, negative_slope):
    # fsrc_ref : (H, N_src, FP) bf16  per-head src features; column `out_feats`
    #            holds 1.0 (fused softmax denominator), columns > out_feats are 0.
    # el_ref   : (H, N_src)  f32     precomputed <attn_l[h], feat[u, h]>
    # er_ref   : (TD, H)     f32     precomputed <attn_r[h], feat[v, h]>
    # adj_ref  : (TD, N_src) int8    adj[v, u] != 0 iff edge u -> v
    # bias_ref : (H, 1, FP)  f32     per-head bias (zero in the padded columns)
    # o_ref    : (H, TD, FP) f32     lane-dense per-head output slabs
    #
    # NOTE: rows with no in-edges produce a uniform average over all src nodes
    # (DGL raises on 0-in-degree nodes); callers must guarantee self-loops.
    mask = adj_ref[...] != 0                               # (TD, N) bool, hoisted
    neg_inf = jnp.float32(-1e30)                           # scores stay f32 to exp
    slope = jnp.float32(negative_slope)

    for h in range(num_heads):                             # H small, unrolled
        e = er_ref[:, h:h + 1] + el_ref[h:h + 1, :]        # (TD, N) f32
        e = jnp.maximum(e, slope * e)                      # leaky-relu, slope < 1
        e = jnp.where(mask, e, neg_inf)                    # single masking pass
        m = jnp.max(e, axis=-1, keepdims=True)             # (TD, 1)
        p = jnp.exp(e - m)                                 # masked -> exactly 0
        # One bf16 MXU matmul yields [aggregation | denominator]: the ones
        # column of fsrc makes res[:, out_feats] == sum_u p[v, u].
        res = jnp.dot(p.astype(jnp.bfloat16), fsrc_ref[h],
                      preferred_element_type=jnp.float32)  # (TD, FP) f32
        inv = pl.reciprocal(res[:, out_feats:out_feats + 1], approx=True)
        # Full lane-dense (TD, FP) store; cols >= out_feats are junk that the
        # wrapper slices off.
        o_ref[h, :, :] = res * inv + bias_ref[h]


def _build_attn_call(n, h, fp, td, out_feats, negative_slope, single_buffer):
    kernel = functools.partial(_gat_attn_kernel, num_heads=h, out_feats=out_feats,
                               negative_slope=negative_slope)
    # Grid-invariant inputs (constant index_map) do not need double buffering.
    resident = {"pipeline_mode": pl.Buffered(1)} if single_buffer else {}
    grid = (pl.cdiv(n, td),)
    cost = pl.CostEstimate(
        flops=2 * n * n * h * fp + 6 * n * n * h,
        transcendentals=n * n * h,
        bytes_accessed=n * n + 2 * h * n * fp + 4 * h * n * fp + 8 * n * h)
    return pl.pallas_call(
        kernel,
        out_shape=jax.ShapeDtypeStruct((h, n, fp), jnp.float32),
        grid_spec=pltpu.PrefetchScalarGridSpec(
            num_scalar_prefetch=0,
            grid=grid,
            in_specs=[
                pl.BlockSpec((h, n, fp), lambda i: (0, 0, 0), **resident),  # fsrc
                pl.BlockSpec((h, n), lambda i: (0, 0), **resident),         # el
                pl.BlockSpec((td, h), lambda i: (i, 0)),                    # er tile
                pl.BlockSpec((td, n), lambda i: (i, 0)),                    # adj int8
                pl.BlockSpec((h, 1, fp), lambda i: (0, 0, 0), **resident),  # bias
            ],
            out_specs=pl.BlockSpec((h, td, fp), lambda i: (0, i, 0)),
        ),
        compiler_params=pltpu.CompilerParams(
            dimension_semantics=("parallel",),
            vmem_limit_bytes=_vmem_limit_bytes()),
        cost_estimate=cost,
    )


def gat_attention(fsrc, el_t, er, adj_i8, bias_h, *, out_feats,
                  negative_slope=0.2, dst_tile=256):
    # fsrc: (H, N, FP) bf16, el_t: (H, N) f32, er: (N, H) f32,
    # adj_i8: (N, N) int8, bias_h: (H, 1, FP) f32.
    # TODO(synk): for graphs where the resident src side (H*N*FP bf16) or a
    # (dst_tile, N) score row exceeds the VMEM budget (hit earliest on v7x's
    # 64 MiB), stream src-node blocks with an online (flash-style) softmax
    # instead of keeping the src side fully resident.
    h, n, fp = fsrc.shape
    td = min(dst_tile, n)
    if td == n and n >= 16:
        # Keep >= 2 grid steps so the "parallel" axis can feed both v7x cores.
        td = ((n + 1) // 2 + 7) // 8 * 8
    args = (fsrc, el_t, er, adj_i8, bias_h)
    try:
        return _build_attn_call(n, h, fp, td, out_feats, negative_slope, True)(*args)
    except Exception:
        # Fallback for jax versions without BlockSpec pipeline_mode support
        # (identical kernel, default double buffering).
        return _build_attn_call(n, h, fp, td, out_feats, negative_slope, False)(*args)


# ------------------------------ Full forward ---------------------------------
def gat_conv_forward(x, adj_i8, fc_w, attn_l, attn_r, bias,
                     num_heads, out_feats, negative_slope=0.2):
    """Equivalent to DGL GATConv.forward with feat_drop=attn_drop=0,
    residual=False, activation=None, bias=True.  Assumes every destination
    node has at least one in-edge (e.g. guaranteed self-loops)."""
    n = x.shape[0]
    h, f = num_heads, out_feats
    fp = 128 * ((f + 1 + 127) // 128)            # per-head lane-padded width

    feat = fc_project(x, fc_w)                   # (N, H*F) f32
    feat_nhf = feat.reshape(n, h, f)

    # el / er are dst-tile invariant: hoisted out of the attention kernel.
    el_t = jnp.sum(feat_nhf * attn_l, axis=-1).T.astype(jnp.float32)  # (H, N)
    er = jnp.sum(feat_nhf * attn_r, axis=-1).astype(jnp.float32)      # (N, H)

    # Per-head, lane-padded, bf16 src features with a fused ones column (the
    # softmax denominator falls out of the aggregation matmul for free).
    fsrc = jnp.zeros((h, n, fp), jnp.bfloat16)
    fsrc = fsrc.at[:, :, :f].set(feat_nhf.transpose(1, 0, 2).astype(jnp.bfloat16))
    fsrc = fsrc.at[:, :, f].set(jnp.bfloat16(1.0))

    bias_h = jnp.zeros((h, 1, fp), jnp.float32)
    bias_h = bias_h.at[:, 0, :f].set(bias.reshape(h, f).astype(jnp.float32))

    out_pad = gat_attention(fsrc, el_t, er, adj_i8, bias_h,
                            out_feats=f, negative_slope=negative_slope)  # (H,N,FP)
    return out_pad[:, :, :f].transpose(1, 0, 2)                          # (N, H, F)


# --------------------------- Pure-JAX reference -------------------------------
def gat_conv_reference(x, adj_i8, fc_w, attn_l, attn_r, bias,
                       num_heads, out_feats, negative_slope=0.2):
    n = x.shape[0]
    feat = (x @ fc_w.T).reshape(n, num_heads, out_feats)   # (N, H, F)
    el = jnp.sum(feat * attn_l, axis=-1)                   # (N, H)
    er = jnp.sum(feat * attn_r, axis=-1)                   # (N, H)
    e = er[:, None, :] + el[None, :, :]                    # (Ndst, Nsrc, H)
    e = jnp.where(e > 0, e, negative_slope * e)
    mask = (adj_i8 > 0)[:, :, None]
    e = jnp.where(mask, e, -1e30)
    m = jnp.max(e, axis=1, keepdims=True)
    p = jnp.exp(e - m) * mask.astype(jnp.float32)
    a = p / jnp.sum(p, axis=1, keepdims=True)              # (Ndst, Nsrc, H)
    rst = jnp.einsum("vuh,uhf->vhf", a, feat)
    return rst + bias.reshape(1, num_heads, out_feats)


# ----------------------------------- Main -------------------------------------
if __name__ == "__main__":
    N = 512          # 2 dst tiles of 256 -> exercises the parallel grid
    IN_FEATS = 32
    OUT_FEATS = 16
    HEADS = 4
    NEG_SLOPE = 0.2

    key = jax.random.PRNGKey(0)
    k_x, k_w, k_al, k_ar = jax.random.split(key, 4)

    # node features
    x = jax.random.normal(k_x, (N, IN_FEATS), dtype=jnp.float32)

    # deterministic "xavier_normal_(gain=sqrt(2))" style init
    gain = math.sqrt(2.0)
    std_w = gain * math.sqrt(2.0 / (IN_FEATS + HEADS * OUT_FEATS))
    fc_w = std_w * jax.random.normal(k_w, (HEADS * OUT_FEATS, IN_FEATS),
                                     dtype=jnp.float32)
    std_a = gain * math.sqrt(2.0 / (HEADS * OUT_FEATS + OUT_FEATS))
    attn_l = std_a * jax.random.normal(k_al, (1, HEADS, OUT_FEATS),
                                       dtype=jnp.float32)
    attn_r = std_a * jax.random.normal(k_ar, (1, HEADS, OUT_FEATS),
                                       dtype=jnp.float32)
    bias = jnp.zeros((HEADS * OUT_FEATS,), dtype=jnp.float32)   # init constant 0

    # deterministic graph: self-loops + a sparse pattern; adj[v, u] = edge u->v.
    # Stored as int8 (1 byte per edge slot of HBM/VMEM traffic).
    u_idx = jnp.arange(N)[None, :]
    v_idx = jnp.arange(N)[:, None]
    adj_i8 = (((u_idx + v_idx) % 3 == 0) | (u_idx == v_idx)).astype(jnp.int8)

    out = gat_conv_forward(x, adj_i8, fc_w, attn_l, attn_r, bias,
                           HEADS, OUT_FEATS, NEG_SLOPE)
    out = jax.block_until_ready(out)

    ref = gat_conv_reference(x, adj_i8, fc_w, attn_l, attn_r, bias,
                             HEADS, OUT_FEATS, NEG_SLOPE)
    assert out.shape == (N, HEADS, OUT_FEATS)
    # bf16 MXU operands + approx (EUP) reciprocal -> slightly looser tolerance
    # than a pure-f32 path.
    max_err = float(jnp.max(jnp.abs(out - ref)))
    assert jnp.allclose(out, ref, atol=2e-2, rtol=2e-2), f"mismatch: {max_err}"

    print("KERNEL_OK")
</pallas_src>

<mosaic_0001>
module attributes {stable_mosaic.version = 11 : i64} {
  func.func @_fc_kernel(%arg0: i32, %arg1: i32, %arg2: memref<512x32xbf16, #tpu.memory_space<vmem>>, %arg3: memref<128x32xbf16, #tpu.memory_space<vmem>>, %arg4: memref<512x128xf32, #tpu.memory_space<vmem>>, %arg5: memref<512x128xf32, #tpu.memory_space<vmem>>) attributes {dimension_semantics = [#tpu.dimension_semantics<parallel>, #tpu.dimension_semantics<arbitrary>], iteration_bounds = array<i64: 1, 1>, scalar_prefetch = 0 : i64, scratch_operands = 1 : i64, tpu.core_type = #tpu.core_type<tc>, window_params = [{transform_indices = @transform_0, window_bounds = array<i64: 512, 32>}, {transform_indices = @transform_1, window_bounds = array<i64: 128, 32>}, {transform_indices = @transform_2, window_bounds = array<i64: 512, 128>}]} {
    %c0_i32 = arith.constant 0 : i32
    %0 = arith.cmpi eq, %arg1, %c0_i32 : i32
    %1 = arith.extui %0 : i1 to i32
    %c0_i32_0 = arith.constant 0 : i32
    %2 = arith.cmpi ne, %1, %c0_i32_0 : i32
    scf.if %2 {
      %cst_10 = arith.constant 0.000000e+00 : f32
      %12 = vector.broadcast %cst_10 : f32 to vector<512x128xf32>
      %c0_11 = arith.constant 0 : index
      %c0_12 = arith.constant 0 : index
      %13 = vector.load %arg5[%c0_11, %c0_12] : memref<512x128xf32, #tpu.memory_space<vmem>>, vector<512x128xf32>
      tpu.vector_store %arg5[%c0_11, %c0_12], %12 {strides = array<i32>} : memref<512x128xf32, #tpu.memory_space<vmem>>, vector<512x128xf32>,
    } else {
    }
    %c0 = arith.constant 0 : index
    %c0_1 = arith.constant 0 : index
    %3 = vector.load %arg5[%c0, %c0_1] : memref<512x128xf32, #tpu.memory_space<vmem>>, vector<512x128xf32>
    %c0_2 = arith.constant 0 : index
    %c0_3 = arith.constant 0 : index
    %4 = vector.load %arg2[%c0_2, %c0_3] : memref<512x32xbf16, #tpu.memory_space<vmem>>, vector<512x32xbf16>
    %c0_4 = arith.constant 0 : index
    %c0_5 = arith.constant 0 : index
    %5 = vector.load %arg3[%c0_4, %c0_5] : memref<128x32xbf16, #tpu.memory_space<vmem>>, vector<128x32xbf16>
    %cst = arith.constant dense<0.000000e+00> : vector<512x128xf32>
    %6 = tpu.matmul %4, %5, %cst {dimension_numbers = #tpu.dot_dimension_numbers<[1], [1], [0], [0], [0, 0, 1, 0], [], []>} : vector<512x32xbf16>, vector<128x32xbf16>, vector<512x128xf32> -> vector<512x128xf32>
    %7 = arith.addf %3, %6 : vector<512x128xf32>
    %c0_6 = arith.constant 0 : index
    %c0_7 = arith.constant 0 : index
    %8 = vector.load %arg5[%c0_6, %c0_7] : memref<512x128xf32, #tpu.memory_space<vmem>>, vector<512x128xf32>
    tpu.vector_store %arg5[%c0_6, %c0_7], %7 {strides = array<i32>} : memref<512x128xf32, #tpu.memory_space<vmem>>, vector<512x128xf32>,
    %c0_i32_8 = arith.constant 0 : i32
    %9 = arith.cmpi eq, %arg1, %c0_i32_8 : i32
    %10 = arith.extui %9 : i1 to i32
    %c0_i32_9 = arith.constant 0 : i32
    %11 = arith.cmpi ne, %10, %c0_i32_9 : i32
    scf.if %11 {
      %c0_10 = arith.constant 0 : index
      %c0_11 = arith.constant 0 : index
      %12 = vector.load %arg5[%c0_10, %c0_11] : memref<512x128xf32, #tpu.memory_space<vmem>>, vector<512x128xf32>
      %c0_12 = arith.constant 0 : index
      %c0_13 = arith.constant 0 : index
      %13 = vector.load %arg4[%c0_12, %c0_13] : memref<512x128xf32, #tpu.memory_space<vmem>>, vector<512x128xf32>
      tpu.vector_store %arg4[%c0_12, %c0_13], %12 {strides = array<i32>} : memref<512x128xf32, #tpu.memory_space<vmem>>, vector<512x128xf32>,
    } else {
    }
    return
  }
  func.func @transform_0(%arg0: i32, %arg1: i32) -> (i32, i32) {
    %c0_i32 = arith.constant 0 : i32
    return %arg0, %arg1 : i32, i32
  }
  func.func @transform_1(%arg0: i32, %arg1: i32) -> (i32, i32) {
    %c0_i32 = arith.constant 0 : i32
    %c0_i32_0 = arith.constant 0 : i32
    return %c0_i32, %arg1 : i32, i32
  }
  func.func @transform_2(%arg0: i32, %arg1: i32) -> (i32, i32) {
    %c0_i32 = arith.constant 0 : i32
    %c0_i32_0 = arith.constant 0 : i32
    return %arg0, %c0_i32 : i32, i32
  }
}

</mosaic_0001>

<bundles_post_ra>
// kernel: tpu_custom_call.1
= control target key start
LH: loop header
LB: loop body
LE: loop exit
PB: predicated region body
PF: predicated region fallthrough
CT: control target
= control target key end

     0   :  { %vm425_vm0 = vcmask 261120   ;;  %s1607_s0 = inlined_call_operand.vmem [shape: bf16[512,32], index: 0, kind: input, shape index: {}]   ;;  %s1608_s1 = inlined_call_operand.vmem [shape: bf16[128,32], index: 1, kind: input, shape index: {}]   ;;  %s1609_s2 = inlined_call_operand.hbm [shape: f32[512,128], index: 2, kind: output, shape index: {}]  }
   0x1   :  { %v1337_v0 = vld [vmem:[%s1608_s1] sm:$0xff]   ;;  %v1338_v1 = vld [vmem:[%s1608_s1 + $0x8] sm:$0xff]   ;;  %v1339_v3 = vld [vmem:[%s1608_s1 + $0x10] sm:$0xff]  }
   0x2   :  { %1318 = vmatprep.subr.msk.bf16.mxu0 %vm425_vm0, %v1337_v0  ;;  %1319 = vmatprep.subr.msk.bf16.mxu1 %vm425_vm0, %v1337_v0  ;;  %v523_v2 = vsel %vm425_vm0, %v1337_v0, 0  ;;  %v526_v4 = vsel %vm425_vm0, %v1338_v1, 0  ;;  %v1345_v5 = vld [vmem:[%s1607_s0] sm:$0xff]   ;;  %v529_v7 = vsel %vm425_vm0, %v1339_v3, 0  ;;  %v1340_v8 = vld [vmem:[%s1608_s1 + $0x18] sm:$0xff]   ;;  %v1342_v12 = vld [vmem:[%s1608_s1 + $0x28] sm:$0xff]  }
   0x3   :  { %1223 = vmatpush3.bf16.xpose.msra.mxu0 %v523_v2  ;;  %1310 = vmatpush3.bf16.xpose.msra.mxu1 %v523_v2  ;;  %v1346_v6 = vld [vmem:[%s1607_s0 + $0x80] sm:$0xff]   ;;  %v532_v9 = vsel %vm425_vm0, %v1340_v8, 0  ;;  %v538_v13 = vsel %vm425_vm0, %v1342_v12, 0  ;;  %v1343_v14 = vld [vmem:[%s1608_s1 + $0x30] sm:$0xff]  }
   0x4   :  { %1320 = vmatprep.subr.msk.bf16.mxu0 %vm425_vm0, %v1338_v1  ;;  %1321 = vmatprep.subr.msk.bf16.mxu1 %vm425_vm0, %v1338_v1  ;;  %v1341_v10 = vld [vmem:[%s1608_s1 + $0x20] sm:$0xff]  }
   0x5   :  { %1238 = vmatprep.mubr.msk.bf16.mxu0 %vm425_vm0, %v1345_v5  ;;  %1270 = vmatprep.mubr.msk.bf16.mxu1 %vm425_vm0, %v1346_v6  ;;  %v535_v11 = vsel %vm425_vm0, %v1341_v10, 0 }
   0xb   :  { %1225 = vmatpush3.bf16.xpose.msra.mxu0 %v526_v4  ;;  %1311 = vmatpush3.bf16.xpose.msra.mxu1 %v526_v4 }
   0xc   :  { %1322 = vmatprep.subr.msk.bf16.mxu0 %vm425_vm0, %v1339_v3  ;;  %1323 = vmatprep.subr.msk.bf16.mxu1 %vm425_vm0, %v1339_v3 }
  0x13   :  { %1227 = vmatpush3.bf16.xpose.msra.mxu0 %v529_v7  ;;  %1312 = vmatpush3.bf16.xpose.msra.mxu1 %v529_v7 }
  0x14   :  { %1324 = vmatprep.subr.msk.bf16.mxu0 %vm425_vm0, %v1340_v8  ;;  %1325 = vmatprep.subr.msk.bf16.mxu1 %vm425_vm0, %v1340_v8 }
  0x1b   :  { %1229 = vmatpush3.bf16.xpose.msra.mxu0 %v532_v9  ;;  %1313 = vmatpush3.bf16.xpose.msra.mxu1 %v532_v9 }
  0x1c   :  { %1326 = vmatprep.subr.msk.bf16.mxu0 %vm425_vm0, %v1341_v10  ;;  %1327 = vmatprep.subr.msk.bf16.mxu1 %vm425_vm0, %v1341_v10 }
  0x23   :  { %1231 = vmatpush3.bf16.xpose.msra.mxu0 %v535_v11  ;;  %1314 = vmatpush3.bf16.xpose.msra.mxu1 %v535_v11 }
  0x24   :  { %1328 = vmatprep.subr.msk.bf16.mxu0 %vm425_vm0, %v1342_v12  ;;  %1329 = vmatprep.subr.msk.bf16.mxu1 %vm425_vm0, %v1342_v12 }
  0x25   :  { %7 = vsyncpa [#allocation4], 0  ;;  %v541_v15 = vsel %vm425_vm0, %v1343_v14, 0  ;;  %v1344_v16 = vld [vmem:[%s1608_s1 + $0x38] sm:$0xff]   ;;  %v1347_v18 = vld [vmem:[%s1607_s0 + $0x8] sm:$0xff]  }
  0x26   :  { %v544_v17 = vsel %vm425_vm0, %v1344_v16, 0  ;;  %v1348_v19 = vld [vmem:[%s1607_s0 + $0x88] sm:$0xff]   ;;  %v1349_v20 = vld [vmem:[%s1607_s0 + $0x10] sm:$0xff]   ;;  %v1351_v22 = vld [vmem:[%s1607_s0 + $0x18] sm:$0xff]  }
  0x27   :  { %v1350_v21 = vld [vmem:[%s1607_s0 + $0x90] sm:$0xff]   ;;  %v1352_v23 = vld [vmem:[%s1607_s0 + $0x98] sm:$0xff]   ;;  %v1353_v24 = vld [vmem:[%s1607_s0 + $0x20] sm:$0xff]  }
  0x28   :  { %v1354_v25 = vld [vmem:[%s1607_s0 + $0xa0] sm:$0xff]   ;;  %v1355_v26 = vld [vmem:[%s1607_s0 + $0x28] sm:$0xff]   ;;  %v1357_v28 = vld [vmem:[%s1607_s0 + $0x30] sm:$0xff]  }
  0x29   :  { %v1356_v27 = vld [vmem:[%s1607_s0 + $0xa8] sm:$0xff]   ;;  %v1358_v29 = vld [vmem:[%s1607_s0 + $0xb0] sm:$0xff]   ;;  %v1359_v30 = vld [vmem:[%s1607_s0 + $0x38] sm:$0xff]  }
  0x2a   :  { %v1360_v31 = vld [vmem:[%s1607_s0 + $0xb8] sm:$0xff]   ;;  %v1361_v32 = vld [vmem:[%s1607_s0 + $0x40] sm:$0xff]   ;;  %v1363_v34 = vld [vmem:[%s1607_s0 + $0x48] sm:$0xff]  }
  0x2b   :  { %1233 = vmatpush3.bf16.xpose.msra.mxu0 %v538_v13  ;;  %1315 = vmatpush3.bf16.xpose.msra.mxu1 %v538_v13  ;;  %v1362_v33 = vld [vmem:[%s1607_s0 + $0xc0] sm:$0xff]   ;;  %v1364_v35 = vld [vmem:[%s1607_s0 + $0xc8] sm:$0xff]   ;;  %v1365_v36 = vld [vmem:[%s1607_s0 + $0x50] sm:$0xff]  }
  0x2c   :  { %1330 = vmatprep.subr.msk.bf16.mxu0 %vm425_vm0, %v1343_v14  ;;  %1331 = vmatprep.subr.msk.bf16.mxu1 %vm425_vm0, %v1343_v14  ;;  %v1366_v37 = vld [vmem:[%s1607_s0 + $0xd0] sm:$0xff]   ;;  %v1367_v38 = vld [vmem:[%s1607_s0 + $0x58] sm:$0xff]   ;;  %v1369_v40 = vld [vmem:[%s1607_s0 + $0x60] sm:$0xff]  }
  0x2d   :  { %v1368_v39 = vld [vmem:[%s1607_s0 + $0xd8] sm:$0xff]   ;;  %v1370_v41 = vld [vmem:[%s1607_s0 + $0xe0] sm:$0xff]   ;;  %v1371_v42 = vld [vmem:[%s1607_s0 + $0x68] sm:$0xff]  }
  0x2e   :  { %v1372_v43 = vld [vmem:[%s1607_s0 + $0xe8] sm:$0xff]   ;;  %v1373_v44 = vld [vmem:[%s1607_s0 + $0x70] sm:$0xff]   ;;  %v1375_v46 = vld [vmem:[%s1607_s0 + $0x78] sm:$0xff]  }
  0x2f   :  { %v1374_v45 = vld [vmem:[%s1607_s0 + $0xf0] sm:$0xff]   ;;  %v1376_v47 = vld [vmem:[%s1607_s0 + $0xf8] sm:$0xff]   ;;  %s1401_s0 = smov [#allocation3]  }
  0x30   :  { %s1099_s3 = sshll.u32 %s1401_s0, 4  ;;  %s1100_s3 = int_to_ptr.vmem [resolvable:$true] %s1099_s3 }
  0x31   :  { %s1377_s4 = scalar_lea.vmem %s1100_s3, 8192  ;;  %p1382_p1 = scmp.lt.s32.totalorder %s1100_s3, %s1100_s3 }
  0x32   :  { %p1378_p0 = scmp.ne.s32.totalorder %s1100_s3, %s1377_s4  ;;  %p1383_p2 = scmp.lt.s32.totalorder %s1377_s4, %s1377_s4 }
  0x33   :  { %1235 = vmatpush3.bf16.xpose.msra.mxu0 %v541_v15  ;;  %1316 = vmatpush3.bf16.xpose.msra.mxu1 %v541_v15 }
  0x34   :  { %1332 = vmatprep.subr.msk.bf16.mxu0 %vm425_vm0, %v1344_v16  ;;  %1333 = vmatprep.subr.msk.bf16.mxu1 %vm425_vm0, %v1344_v16  ;;  %p1384_p3 = por %p1383_p2, %p1382_p1 }
  0x36   :  { %p1385_p4 = pnand %p1384_p3, %p1378_p0 }
  0x3b   :  { %1237 = vmatpush3.bf16.xpose.msra.mxu0 %v544_v17  ;;  %1317 = vmatpush3.bf16.xpose.msra.mxu1 %v544_v17 }
  0x42   :  { %1239 = vmatmul.mubr.msk.bf16.vlgmr.msra.gmra.mrb[0].mxu0 %vm425_vm0, %v1347_v18  ;;  %1271 = vmatmul.mubr.msk.bf16.vlgmr.msra.gmra.mrb[0].mxu1 %vm425_vm0, %v1348_v19 }
  0x43   :  { %1242 = vmatprep.mubr.msk.bf16.mxu0 %vm425_vm0, %v1349_v20  ;;  %1274 = vmatprep.mubr.msk.bf16.mxu1 %vm425_vm0, %v1350_v21 }
  0x4a   :  { %1243 = vmatmul.mubr.msk.bf16.gmra.mrb[4].mxu0 %vm425_vm0, %v1351_v22  ;;  %1275 = vmatmul.mubr.msk.bf16.gmra.mrb[4].mxu1 %vm425_vm0, %v1352_v23 }
  0x4b   :  { %1246 = vmatprep.mubr.msk.bf16.mxu0 %vm425_vm0, %v1353_v24  ;;  %1278 = vmatprep.mubr.msk.bf16.mxu1 %vm425_vm0, %v1354_v25 }
  0x52   :  { %1247 = vmatmul.mubr.msk.bf16.gmra.mrb[8].mxu0 %vm425_vm0, %v1355_v26  ;;  %1279 = vmatmul.mubr.msk.bf16.gmra.mrb[8].mxu1 %vm425_vm0, %v1356_v27 }
  0x53   :  { %1250 = vmatprep.mubr.msk.bf16.mxu0 %vm425_vm0, %v1357_v28  ;;  %1282 = vmatprep.mubr.msk.bf16.mxu1 %vm425_vm0, %v1358_v29 }
  0x5a   :  { %1251 = vmatmul.mubr.msk.bf16.gmra.mrb[12].mxu0 %vm425_vm0, %v1359_v30  ;;  %1283 = vmatmul.mubr.msk.bf16.gmra.mrb[12].mxu1 %vm425_vm0, %v1360_v31 }
  0x5b   :  { %1254 = vmatprep.mubr.msk.bf16.mxu0 %vm425_vm0, %v1361_v32  ;;  %1286 = vmatprep.mubr.msk.bf16.mxu1 %vm425_vm0, %v1362_v33 }
  0x62   :  { %1255 = vmatmul.mubr.msk.bf16.gmra.mrb[16].mxu0 %vm425_vm0, %v1363_v34  ;;  %1287 = vmatmul.mubr.msk.bf16.gmra.mrb[16].mxu1 %vm425_vm0, %v1364_v35 }
  0x63   :  { %1258 = vmatprep.mubr.msk.bf16.mxu0 %vm425_vm0, %v1365_v36  ;;  %1290 = vmatprep.mubr.msk.bf16.mxu1 %vm425_vm0, %v1366_v37 }
  0x6a   :  { %1259 = vmatmul.mubr.msk.bf16.gmra.mrb[20].mxu0 %vm425_vm0, %v1367_v38  ;;  %1291 = vmatmul.mubr.msk.bf16.gmra.mrb[20].mxu1 %vm425_vm0, %v1368_v39 }
  0x6b   :  { %1262 = vmatprep.mubr.msk.bf16.mxu0 %vm425_vm0, %v1369_v40  ;;  %1294 = vmatprep.mubr.msk.bf16.mxu1 %vm425_vm0, %v1370_v41 }
  0x72   :  { %1263 = vmatmul.mubr.msk.bf16.gmra.mrb[24].mxu0 %vm425_vm0, %v1371_v42  ;;  %1295 = vmatmul.mubr.msk.bf16.gmra.mrb[24].mxu1 %vm425_vm0, %v1372_v43 }
  0x73   :  { %1266 = vmatprep.mubr.msk.bf16.mxu0 %vm425_vm0, %v1373_v44  ;;  %1298 = vmatprep.mubr.msk.bf16.mxu1 %vm425_vm0, %v1374_v45 }
  0x7a   :  { %1267 = vmatmul.mubr.msk.bf16.gmra.mrb[28].mxu0 %vm425_vm0, %v1375_v46  ;;  %1299 = vmatmul.mubr.msk.bf16.gmra.mrb[28].mxu1 %vm425_vm0, %v1376_v47 }
 0x115   :  { %v1240_v48 = vpop.f32.mrb[0].mxu0  ;;  %v1272_v49 = vpop.f32.mrb[0].mxu1 }
 0x116   :  { %1032 = vst [vmem:[#allocation3 + $0x10] sm:$0xff] %v1240_v48  ;;  %1064 = vst [vmem:[#allocation3 + $0x110] sm:$0xff] %v1272_v49  ;;  %v580_v50 = vpop.f32.mrb[1].mxu0  ;;  %v708_v51 = vpop.f32.mrb[1].mxu1 }
 0x117   :  { %1030 = vst [vmem:[#allocation3] sm:$0xff] %v580_v50  ;;  %1062 = vst [vmem:[#allocation3 + $0x100] sm:$0xff] %v708_v51  ;;  %v1241_v52 = vpop.f32.mrb[2].mxu0  ;;  %v1273_v53 = vpop.f32.mrb[2].mxu1 }
 0x118   :  { %1033 = vst [vmem:[#allocation3 + $0x18] sm:$0xff] %v1241_v52  ;;  %1065 = vst [vmem:[#allocation3 + $0x118] sm:$0xff] %v1273_v53  ;;  %v583_v54 = vpop.f32.mrb[3].mxu0  ;;  %v711_v55 = vpop.f32.mrb[3].mxu1 }
 0x119   :  { %1031 = vst [vmem:[#allocation3 + $0x8] sm:$0xff] %v583_v54  ;;  %1063 = vst [vmem:[#allocation3 + $0x108] sm:$0xff] %v711_v55 }
 0x11d   :  { %v1244_v56 = vpop.f32.mrb[4].mxu0  ;;  %v1276_v57 = vpop.f32.mrb[4].mxu1 }
 0x11e   :  { %1036 = vst [vmem:[#allocation3 + $0x30] sm:$0xff] %v1244_v56  ;;  %1068 = vst [vmem:[#allocation3 + $0x130] sm:$0xff] %v1276_v57  ;;  %v596_v58 = vpop.f32.mrb[5].mxu0  ;;  %v724_v59 = vpop.f32.mrb[5].mxu1 }
 0x11f   :  { %1034 = vst [vmem:[#allocation3 + $0x20] sm:$0xff] %v596_v58  ;;  %1066 = vst [vmem:[#allocation3 + $0x120] sm:$0xff] %v724_v59  ;;  %v1245_v60 = vpop.f32.mrb[6].mxu0  ;;  %v1277_v61 = vpop.f32.mrb[6].mxu1 }
 0x120   :  { %1037 = vst [vmem:[#allocation3 + $0x38] sm:$0xff] %v1245_v60  ;;  %1069 = vst [vmem:[#allocation3 + $0x138] sm:$0xff] %v1277_v61  ;;  %v599_v62 = vpop.f32.mrb[7].mxu0  ;;  %v727_v63 = vpop.f32.mrb[7].mxu1 }
 0x121   :  { %1035 = vst [vmem:[#allocation3 + $0x28] sm:$0xff] %v599_v62  ;;  %1067 = vst [vmem:[#allocation3 + $0x128] sm:$0xff] %v727_v63 }
 0x125   :  { %v1248_v0 = vpop.f32.mrb[8].mxu0  ;;  %v1280_v1 = vpop.f32.mrb[8].mxu1 }
 0x126   :  { %1040 = vst [vmem:[#allocation3 + $0x50] sm:$0xff] %v1248_v0  ;;  %1072 = vst [vmem:[#allocation3 + $0x150] sm:$0xff] %v1280_v1  ;;  %v612_v2 = vpop.f32.mrb[9].mxu0  ;;  %v740_v3 = vpop.f32.mrb[9].mxu1 }
 0x127   :  { %1038 = vst [vmem:[#allocation3 + $0x40] sm:$0xff] %v612_v2  ;;  %1070 = vst [vmem:[#allocation3 + $0x140] sm:$0xff] %v740_v3  ;;  %v1249_v4 = vpop.f32.mrb[10].mxu0  ;;  %v1281_v5 = vpop.f32.mrb[10].mxu1 }
 0x128   :  { %1041 = vst [vmem:[#allocation3 + $0x58] sm:$0xff] %v1249_v4  ;;  %1073 = vst [vmem:[#allocation3 + $0x158] sm:$0xff] %v1281_v5  ;;  %v615_v6 = vpop.f32.mrb[11].mxu0  ;;  %v743_v7 = vpop.f32.mrb[11].mxu1 }
 0x129   :  { %1039 = vst [vmem:[#allocation3 + $0x48] sm:$0xff] %v615_v6  ;;  %1071 = vst [vmem:[#allocation3 + $0x148] sm:$0xff] %v743_v7 }
 0x12d   :  { %v1252_v8 = vpop.f32.mrb[12].mxu0  ;;  %v1284_v9 = vpop.f32.mrb[12].mxu1 }
 0x12e   :  { %1044 = vst [vmem:[#allocation3 + $0x70] sm:$0xff] %v1252_v8  ;;  %1076 = vst [vmem:[#allocation3 + $0x170] sm:$0xff] %v1284_v9  ;;  %v628_v10 = vpop.f32.mrb[13].mxu0  ;;  %v756_v11 = vpop.f32.mrb[13].mxu1 }
 0x12f   :  { %1042 = vst [vmem:[#allocation3 + $0x60] sm:$0xff] %v628_v10  ;;  %1074 = vst [vmem:[#allocation3 + $0x160] sm:$0xff] %v756_v11  ;;  %v1253_v12 = vpop.f32.mrb[14].mxu0  ;;  %v1285_v13 = vpop.f32.mrb[14].mxu1 }
 0x130   :  { %1045 = vst [vmem:[#allocation3 + $0x78] sm:$0xff] %v1253_v12  ;;  %1077 = vst [vmem:[#allocation3 + $0x178] sm:$0xff] %v1285_v13  ;;  %v631_v14 = vpop.f32.mrb[15].mxu0  ;;  %v759_v15 = vpop.f32.mrb[15].mxu1 }
 0x131   :  { %1043 = vst [vmem:[#allocation3 + $0x68] sm:$0xff] %v631_v14  ;;  %1075 = vst [vmem:[#allocation3 + $0x168] sm:$0xff] %v759_v15 }
 0x135   :  { %v1256_v16 = vpop.f32.mrb[16].mxu0  ;;  %v1288_v17 = vpop.f32.mrb[16].mxu1 }
 0x136   :  { %1048 = vst [vmem:[#allocation3 + $0x90] sm:$0xff] %v1256_v16  ;;  %1080 = vst [vmem:[#allocation3 + $0x190] sm:$0xff] %v1288_v17  ;;  %v644_v18 = vpop.f32.mrb[17].mxu0  ;;  %v772_v19 = vpop.f32.mrb[17].mxu1 }
 0x137   :  { %1046 = vst [vmem:[#allocation3 + $0x80] sm:$0xff] %v644_v18  ;;  %1078 = vst [vmem:[#allocation3 + $0x180] sm:$0xff] %v772_v19  ;;  %v1257_v20 = vpop.f32.mrb[18].mxu0  ;;  %v1289_v21 = vpop.f32.mrb[18].mxu1 }
 0x138   :  { %1049 = vst [vmem:[#allocation3 + $0x98] sm:$0xff] %v1257_v20  ;;  %1081 = vst [vmem:[#allocation3 + $0x198] sm:$0xff] %v1289_v21  ;;  %v647_v22 = vpop.f32.mrb[19].mxu0  ;;  %v775_v23 = vpop.f32.mrb[19].mxu1 }
 0x139   :  { %1047 = vst [vmem:[#allocation3 + $0x88] sm:$0xff] %v647_v22  ;;  %1079 = vst [vmem:[#allocation3 + $0x188] sm:$0xff] %v775_v23 }
 0x13d   :  { %v1260_v24 = vpop.f32.mrb[20].mxu0  ;;  %v1292_v25 = vpop.f32.mrb[20].mxu1 }
 0x13e   :  { %1052 = vst [vmem:[#allocation3 + $0xb0] sm:$0xff] %v1260_v24  ;;  %1084 = vst [vmem:[#allocation3 + $0x1b0] sm:$0xff] %v1292_v25  ;;  %v660_v26 = vpop.f32.mrb[21].mxu0  ;;  %v788_v27 = vpop.f32.mrb[21].mxu1 }
 0x13f   :  { %1050 = vst [vmem:[#allocation3 + $0xa0] sm:$0xff] %v660_v26  ;;  %1082 = vst [vmem:[#allocation3 + $0x1a0] sm:$0xff] %v788_v27  ;;  %v1261_v28 = vpop.f32.mrb[22].mxu0  ;;  %v1293_v29 = vpop.f32.mrb[22].mxu1 }
 0x140   :  { %1053 = vst [vmem:[#allocation3 + $0xb8] sm:$0xff] %v1261_v28  ;;  %1085 = vst [vmem:[#allocation3 + $0x1b8] sm:$0xff] %v1293_v29  ;;  %v663_v30 = vpop.f32.mrb[23].mxu0  ;;  %v791_v31 = vpop.f32.mrb[23].mxu1 }
 0x141   :  { %1051 = vst [vmem:[#allocation3 + $0xa8] sm:$0xff] %v663_v30  ;;  %1083 = vst [vmem:[#allocation3 + $0x1a8] sm:$0xff] %v791_v31 }
 0x145   :  { %v1264_v32 = vpop.f32.mrb[24].mxu0  ;;  %v1296_v33 = vpop.f32.mrb[24].mxu1 }
 0x146   :  { %1056 = vst [vmem:[#allocation3 + $0xd0] sm:$0xff] %v1264_v32  ;;  %1088 = vst [vmem:[#allocation3 + $0x1d0] sm:$0xff] %v1296_v33  ;;  %v676_v34 = vpop.f32.mrb[25].mxu0  ;;  %v804_v35 = vpop.f32.mrb[25].mxu1 }
 0x147   :  { %1054 = vst [vmem:[#allocation3 + $0xc0] sm:$0xff] %v676_v34  ;;  %1086 = vst [vmem:[#allocation3 + $0x1c0] sm:$0xff] %v804_v35  ;;  %v1265_v36 = vpop.f32.mrb[26].mxu0  ;;  %v1297_v37 = vpop.f32.mrb[26].mxu1 }
 0x148   :  { %1057 = vst [vmem:[#allocation3 + $0xd8] sm:$0xff] %v1265_v36  ;;  %1089 = vst [vmem:[#allocation3 + $0x1d8] sm:$0xff] %v1297_v37  ;;  %v679_v38 = vpop.f32.mrb[27].mxu0  ;;  %v807_v39 = vpop.f32.mrb[27].mxu1 }
 0x149   :  { %1055 = vst [vmem:[#allocation3 + $0xc8] sm:$0xff] %v679_v38  ;;  %1087 = vst [vmem:[#allocation3 + $0x1c8] sm:$0xff] %v807_v39 }
 0x14d   :  { %v1268_v40 = vpop.f32.mrb[28].mxu0  ;;  %v1300_v41 = vpop.f32.mrb[28].mxu1 }
 0x14e   :  { %1060 = vst [vmem:[#allocation3 + $0xf0] sm:$0xff] %v1268_v40  ;;  %1092 = vst [vmem:[#allocation3 + $0x1f0] sm:$0xff] %v1300_v41  ;;  %v692_v42 = vpop.f32.mrb[29].mxu0  ;;  %v820_v43 = vpop.f32.mrb[29].mxu1 }
 0x14f   :  { %1058 = vst [vmem:[#allocation3 + $0xe0] sm:$0xff] %v692_v42  ;;  %1090 = vst [vmem:[#allocation3 + $0x1e0] sm:$0xff] %v820_v43  ;;  %v1269_v44 = vpop.f32.mrb[30].mxu0  ;;  %v1301_v45 = vpop.f32.mrb[30].mxu1 }
 0x150   :  { %1061 = vst [vmem:[#allocation3 + $0xf8] sm:$0xff] %v1269_v44  ;;  %1093 = vst [vmem:[#allocation3 + $0x1f8] sm:$0xff] %v1301_v45  ;;  %v695_v46 = vpop.f32.mrb[31].mxu0  ;;  %v823_v47 = vpop.f32.mrb[31].mxu1 }
 0x151   :  { %1059 = vst [vmem:[#allocation3 + $0xe8] sm:$0xff] %v695_v46  ;;  %1091 = vst [vmem:[#allocation3 + $0x1e8] sm:$0xff] %v823_v47 }
 0x152   :  { %1388 = shalt.err (!%p1385_p4)
}
 0x153   :  { %s1389_s6 = scalar_lea.hbm %s1609_s2, 8192 }
 0x154   :  { %p1390_p5 = scmp.ne.s32.totalorder %s1609_s2, %s1389_s6  ;;  %p1393_p6 = scmp.lt.u32.totalorder %s1389_s6, %s1609_s2 }
 0x156   :  { %p1395_p7 = pnand %p1393_p6, %p1390_p5 }
 0x158   :  { %1398 = shalt.err (!%p1395_p7)
}
 0x159   :  { %s1402_s11 = smov 128   ;;  %s1403_s12 = smov 8  }
 0x15a   :  { %1105 = dma.vmem_to_hbm [thread:$0]  %s1100_s3, 8192, %s1609_s2, [#allocation4], %s1402_s11, %s1402_s11, %s1403_s12  }
 0x15b   :  { %1399 = dma.done.wait [#allocation4], 8192  }
 0x15c   :  { %1400 = vsyncadd [#allocation4], 4294959104 }
 0x15d   :  { %1109 = vsyncpa [#allocation4], 1 }

</bundles_post_ra>
